<compile_context>
chip_gen: v7x
topology: tpu7x:2x2x1
jax: 0.10.0
libtpu: 0.0.40
codegen_flags: <defaults>
</compile_context>

<pallas_src>
import jax
import jax.numpy as jnp
from jax.experimental import pallas as pl
from jax.experimental.pallas import tpu as pltpu

_LANE = 128      # vreg lane width
_SUBLANE = 8     # f32 sublane count


def _round_up(x, m):
    return ((x + m - 1) // m) * m


def _make_mlp_kernel(num_linears):
    """Fused MLP kernel: all layers computed back-to-back in VMEM."""

    def kernel(*refs):
        # refs = (x, w_0..w_{L-1}, b_0..b_{L-1}, out)
        x_ref = refs[0]
        w_refs = refs[1: 1 + num_linears]
        b_refs = refs[1 + num_linears: 1 + 2 * num_linears]
        o_ref = refs[1 + 2 * num_linears]

        h = x_ref[...]                      # compute dtype (bf16 or f32)
        for i in range(num_linears):
            # MXU matmul with f32 accumulation; (1, out) bias broadcasts over
            # batch rows implicitly.  Bias add / ReLU are done in f32.
            acc = jnp.dot(h, w_refs[i][...], preferred_element_type=jnp.float32)
            acc = acc + b_refs[i][...]
            if i < num_linears - 1:
                acc = jnp.maximum(acc, 0.0)            # ReLU on the VPU
                h = acc.astype(w_refs[i + 1].dtype)    # back to compute dtype
            else:
                o_ref[...] = acc.astype(o_ref.dtype)

    return kernel


# Named index_maps (avoid late-binding closure pitfalls).
def _row_block_map(i):
    return (i, 0)


def _resident_map(i):
    return (0, 0)


def prepare_branch_net_params(weights_t, biases, *, compute_dtype=jnp.bfloat16):
    """Pad + cast parameters ONCE (do not call this per forward pass).

    Args:
      weights_t: list of (fan_in, fan_out) matrices (transposed vs PyTorch).
      biases: list of (1, fan_out) row vectors.
      compute_dtype: MXU operand dtype (bf16 recommended; f32 for exactness).
    Returns:
      (weights_p, biases_p): hidden dims lane-padded to multiples of 128;
      first weight keeps its input rows, last weight keeps its output cols
      unpadded.  Weights cast to compute_dtype; biases kept in f32.
    """
    num_linears = len(weights_t)
    dims = [weights_t[0].shape[0]] + [w.shape[1] for w in weights_t]
    # Pad only the hidden feature dims; leave input and output dims unpadded
    # so x / out move over HBM at their real width.
    dims_p = ([dims[0]]
              + [_round_up(d, _LANE) for d in dims[1:-1]]
              + [dims[-1]])

    weights_p, biases_p = [], []
    for i in range(num_linears):
        w, b = weights_t[i], biases[i]
        wp = (jnp.zeros((dims_p[i], dims_p[i + 1]), jnp.float32)
              .at[: w.shape[0], : w.shape[1]].set(w)
              .astype(compute_dtype))
        bp = (jnp.zeros((1, dims_p[i + 1]), jnp.float32)
              .at[:, : b.shape[1]].set(b))
        weights_p.append(wp)
        biases_p.append(bp)
    return weights_p, biases_p


def branch_net_forward(x, weights_p, biases_p, *, max_batch_tile=2048):
    """Run the fused BranchNet MLP.

    Args:
      x: (batch, input_size) float32.
      weights_p, biases_p: output of `prepare_branch_net_params`.
      max_batch_tile: cap on the batch tile (rows per grid step).
    Returns:
      (batch, output_size) float32.
    """
    num_linears = len(weights_p)
    batch, in_size = x.shape
    assert in_size == weights_p[0].shape[0], "input size mismatch"
    out_size = weights_p[-1].shape[1]
    compute_dtype = weights_p[0].dtype

    # ---- Batch tiling: TB multiple of 8 sublanes, capped by max_batch_tile.
    #      Keep at least 2 grid steps when the batch allows it so both v7x
    #      TensorCores get work under dimension_semantics=("parallel",). ----
    tb = min(_round_up(max_batch_tile, _SUBLANE), _round_up(batch, _SUBLANE))
    if batch > _SUBLANE:
        tb = min(tb, _round_up(pl.cdiv(batch, 2), _SUBLANE))
    batch_p = _round_up(batch, tb)

    # Cast once to the compute dtype; pad batch rows with zeros only if needed
    # (at most tb-1 extra rows).  No lane padding of x in HBM.
    x_in = x.astype(compute_dtype)
    if batch_p != batch:
        x_in = jnp.zeros((batch_p, in_size), compute_dtype).at[:batch].set(x_in)

    grid = (batch_p // tb,)

    # x / out: full-last-dim blocks (legal: last block dim == full array dim).
    in_specs = [pl.BlockSpec((tb, in_size), _row_block_map)]
    # Weights / biases: whole-array blocks, constant index_map -> VMEM-resident.
    in_specs += [pl.BlockSpec(w.shape, _resident_map) for w in weights_p]
    in_specs += [pl.BlockSpec(b.shape, _resident_map) for b in biases_p]

    out_p = pl.pallas_call(
        _make_mlp_kernel(num_linears),
        out_shape=jax.ShapeDtypeStruct((batch_p, out_size), jnp.float32),
        grid=grid,
        in_specs=in_specs,
        out_specs=pl.BlockSpec((tb, out_size), _row_block_map),
        compiler_params=pltpu.CompilerParams(
            # Batch steps are independent -> shard across TCs on v7x.
            dimension_semantics=("parallel",),
        ),
    )(x_in, *weights_p, *biases_p)

    # Slice off batch padding (output feature dim is already unpadded).
    return out_p[:batch]


def init_branch_net_params(key, input_size, hidden_size, output_size,
                           num_hidden_layers):
    """Deterministic init mirroring nn.Linear shapes.

    Layer dims: [in -> h] + [h -> h] * (num_hidden_layers - 1) + [h -> out].
    Returns weights transposed to (fan_in, fan_out) and biases (1, fan_out).
    """
    dims = [input_size] + [hidden_size] * num_hidden_layers + [output_size]
    weights_t, biases = [], []
    for fan_in, fan_out in zip(dims[:-1], dims[1:]):
        key, kw, kb = jax.random.split(key, 3)
        bound = 1.0 / jnp.sqrt(jnp.float32(fan_in))
        w = jax.random.uniform(kw, (fan_in, fan_out), jnp.float32, -bound, bound)
        b = jax.random.uniform(kb, (1, fan_out), jnp.float32, -bound, bound)
        weights_t.append(w)
        biases.append(b)
    return weights_t, biases


def branch_net_reference(x, weights_t, biases):
    """Plain-JAX reference for correctness checking."""
    h = x
    n = len(weights_t)
    for i, (w, b) in enumerate(zip(weights_t, biases)):
        h = h @ w + b
        if i < n - 1:
            h = jnp.maximum(h, 0.0)
    return h


if __name__ == "__main__":
    # Module hyperparameters (small, consistent with the forward pass).
    input_size = 16
    hidden_size = 32
    output_size = 8
    num_hidden_layers = 3   # -> 4 Linear layers total
    batch = 36              # deliberately not a multiple of 8

    key = jax.random.PRNGKey(0)
    key, kx = jax.random.split(key)
    x = jax.random.normal(kx, (batch, input_size), jnp.float32)

    weights_t, biases = init_branch_net_params(
        key, input_size, hidden_size, output_size, num_hidden_layers
    )
    ref = branch_net_reference(x, weights_t, biases)

    # ---- f32 compute path: bit-for-bit comparable to the f32 reference. ----
    w_f32, b_f32 = prepare_branch_net_params(
        weights_t, biases, compute_dtype=jnp.float32)
    out_f32 = jax.block_until_ready(branch_net_forward(x, w_f32, b_f32))
    assert out_f32.shape == (batch, output_size)
    assert jnp.allclose(out_f32, ref, atol=1e-5, rtol=1e-5), "mismatch (f32)"

    # ---- bf16 operands / f32 accumulation (default, MXU-native). ----
    w_bf16, b_bf16 = prepare_branch_net_params(weights_t, biases)
    out_bf16 = jax.block_until_ready(branch_net_forward(x, w_bf16, b_bf16))
    assert out_bf16.shape == (batch, output_size)
    assert jnp.allclose(out_bf16, ref, atol=3e-2, rtol=3e-2), "mismatch (bf16)"

    # ---- Multi-step grid path (exercises batch tiling + padding + resident
    #      weights across grid steps). ----
    out_tiled = jax.block_until_ready(
        branch_net_forward(x, w_f32, b_f32, max_batch_tile=8))
    assert out_tiled.shape == (batch, output_size)
    assert jnp.allclose(out_tiled, ref, atol=1e-5, rtol=1e-5), "mismatch (tiled)"

    print("KERNEL_OK")
</pallas_src>

<mosaic_0001>
module attributes {stable_mosaic.version = 11 : i64} {
  func.func @kernel(%arg0: i32, %arg1: memref<24x16xf32, #tpu.memory_space<vmem>>, %arg2: memref<16x128xf32, #tpu.memory_space<vmem>>, %arg3: memref<128x128xf32, #tpu.memory_space<vmem>>, %arg4: memref<128x128xf32, #tpu.memory_space<vmem>>, %arg5: memref<128x8xf32, #tpu.memory_space<vmem>>, %arg6: memref<1x128xf32, #tpu.memory_space<vmem>>, %arg7: memref<1x128xf32, #tpu.memory_space<vmem>>, %arg8: memref<1x128xf32, #tpu.memory_space<vmem>>, %arg9: memref<1x8xf32, #tpu.memory_space<vmem>>, %arg10: memref<24x8xf32, #tpu.memory_space<vmem>>) attributes {dimension_semantics = [#tpu.dimension_semantics<parallel>], iteration_bounds = array<i64: 2>, scalar_prefetch = 0 : i64, scratch_operands = 0 : i64, tpu.core_type = #tpu.core_type<tc>, window_params = [{transform_indices = @transform_0, window_bounds = array<i64: 24, 16>}, {pipeline_mode = #tpu.pipeline_mode<synchronous>, transform_indices = @transform_1, window_bounds = array<i64: 16, 128>}, {pipeline_mode = #tpu.pipeline_mode<synchronous>, transform_indices = @transform_2, window_bounds = array<i64: 128, 128>}, {pipeline_mode = #tpu.pipeline_mode<synchronous>, transform_indices = @transform_3, window_bounds = array<i64: 128, 128>}, {pipeline_mode = #tpu.pipeline_mode<synchronous>, transform_indices = @transform_4, window_bounds = array<i64: 128, 8>}, {pipeline_mode = #tpu.pipeline_mode<synchronous>, transform_indices = @transform_5, window_bounds = array<i64: 1, 128>}, {pipeline_mode = #tpu.pipeline_mode<synchronous>, transform_indices = @transform_6, window_bounds = array<i64: 1, 128>}, {pipeline_mode = #tpu.pipeline_mode<synchronous>, transform_indices = @transform_7, window_bounds = array<i64: 1, 128>}, {pipeline_mode = #tpu.pipeline_mode<synchronous>, transform_indices = @transform_8, window_bounds = array<i64: 1, 8>}, {transform_indices = @transform_9, window_bounds = array<i64: 24, 8>}]} {
    %c0 = arith.constant 0 : index
    %c0_0 = arith.constant 0 : index
    %0 = vector.load %arg1[%c0, %c0_0] : memref<24x16xf32, #tpu.memory_space<vmem>>, vector<24x16xf32>
    %c0_1 = arith.constant 0 : index
    %c0_2 = arith.constant 0 : index
    %1 = vector.load %arg2[%c0_1, %c0_2] : memref<16x128xf32, #tpu.memory_space<vmem>>, vector<16x128xf32>
    %cst = arith.constant dense<0.000000e+00> : vector<24x128xf32>
    %2 = tpu.matmul %0, %1, %cst {dimension_numbers = #tpu.dot_dimension_numbers<[1], [0], [0], [1], [0, 0, 1, 1], [], []>} : vector<24x16xf32>, vector<16x128xf32>, vector<24x128xf32> -> vector<24x128xf32>
    %c0_3 = arith.constant 0 : index
    %c0_4 = arith.constant 0 : index
    %3 = vector.load %arg6[%c0_3, %c0_4] : memref<1x128xf32, #tpu.memory_space<vmem>>, vector<1x128xf32>
    %4 = vector.broadcast %3 : vector<1x128xf32> to vector<24x128xf32>
    %5 = arith.addf %2, %4 : vector<24x128xf32>
    %cst_5 = arith.constant 0.000000e+00 : f32
    %6 = vector.broadcast %cst_5 : f32 to vector<24x128xf32>
    %7 = arith.maximumf %5, %6 : vector<24x128xf32>
    %c0_6 = arith.constant 0 : index
    %c0_7 = arith.constant 0 : index
    %8 = vector.load %arg3[%c0_6, %c0_7] : memref<128x128xf32, #tpu.memory_space<vmem>>, vector<128x128xf32>
    %cst_8 = arith.constant dense<0.000000e+00> : vector<24x128xf32>
    %9 = tpu.matmul %7, %8, %cst_8 {dimension_numbers = #tpu.dot_dimension_numbers<[1], [0], [0], [1], [0, 0, 1, 1], [], []>} : vector<24x128xf32>, vector<128x128xf32>, vector<24x128xf32> -> vector<24x128xf32>
    %c0_9 = arith.constant 0 : index
    %c0_10 = arith.constant 0 : index
    %10 = vector.load %arg7[%c0_9, %c0_10] : memref<1x128xf32, #tpu.memory_space<vmem>>, vector<1x128xf32>
    %11 = vector.broadcast %10 : vector<1x128xf32> to vector<24x128xf32>
    %12 = arith.addf %9, %11 : vector<24x128xf32>
    %cst_11 = arith.constant 0.000000e+00 : f32
    %13 = vector.broadcast %cst_11 : f32 to vector<24x128xf32>
    %14 = arith.maximumf %12, %13 : vector<24x128xf32>
    %c0_12 = arith.constant 0 : index
    %c0_13 = arith.constant 0 : index
    %15 = vector.load %arg4[%c0_12, %c0_13] : memref<128x128xf32, #tpu.memory_space<vmem>>, vector<128x128xf32>
    %cst_14 = arith.constant dense<0.000000e+00> : vector<24x128xf32>
    %16 = tpu.matmul %14, %15, %cst_14 {dimension_numbers = #tpu.dot_dimension_numbers<[1], [0], [0], [1], [0, 0, 1, 1], [], []>} : vector<24x128xf32>, vector<128x128xf32>, vector<24x128xf32> -> vector<24x128xf32>
    %c0_15 = arith.constant 0 : index
    %c0_16 = arith.constant 0 : index
    %17 = vector.load %arg8[%c0_15, %c0_16] : memref<1x128xf32, #tpu.memory_space<vmem>>, vector<1x128xf32>
    %18 = vector.broadcast %17 : vector<1x128xf32> to vector<24x128xf32>
    %19 = arith.addf %16, %18 : vector<24x128xf32>
    %cst_17 = arith.constant 0.000000e+00 : f32
    %20 = vector.broadcast %cst_17 : f32 to vector<24x128xf32>
    %21 = arith.maximumf %19, %20 : vector<24x128xf32>
    %c0_18 = arith.constant 0 : index
    %c0_19 = arith.constant 0 : index
    %22 = vector.load %arg5[%c0_18, %c0_19] : memref<128x8xf32, #tpu.memory_space<vmem>>, vector<128x8xf32>
    %cst_20 = arith.constant dense<0.000000e+00> : vector<24x8xf32>
    %23 = tpu.matmul %21, %22, %cst_20 {dimension_numbers = #tpu.dot_dimension_numbers<[1], [0], [0], [1], [0, 0, 1, 1], [], []>} : vector<24x128xf32>, vector<128x8xf32>, vector<24x8xf32> -> vector<24x8xf32>
    %c0_21 = arith.constant 0 : index
    %c0_22 = arith.constant 0 : index
    %24 = vector.load %arg9[%c0_21, %c0_22] : memref<1x8xf32, #tpu.memory_space<vmem>>, vector<1x8xf32>
    %25 = vector.broadcast %24 : vector<1x8xf32> to vector<24x8xf32>
    %26 = arith.addf %23, %25 : vector<24x8xf32>
    %c0_23 = arith.constant 0 : index
    %c0_24 = arith.constant 0 : index
    %27 = vector.load %arg10[%c0_23, %c0_24] : memref<24x8xf32, #tpu.memory_space<vmem>>, vector<24x8xf32>
    tpu.vector_store %arg10[%c0_23, %c0_24], %26 {strides = array<i32>} : memref<24x8xf32, #tpu.memory_space<vmem>>, vector<24x8xf32>,
    return
  }
  func.func @transform_0(%arg0: i32) -> (i32, i32) {
    %c0_i32 = arith.constant 0 : i32
    %c0_i32_0 = arith.constant 0 : i32
    return %arg0, %c0_i32 : i32, i32
  }
  func.func @transform_1(%arg0: i32) -> (i32, i32) {
    %c0_i32 = arith.constant 0 : i32
    %c0_i32_0 = arith.constant 0 : i32
    %c0_i32_1 = arith.constant 0 : i32
    return %c0_i32, %c0_i32_0 : i32, i32
  }
  func.func @transform_2(%arg0: i32) -> (i32, i32) {
    %c0_i32 = arith.constant 0 : i32
    %c0_i32_0 = arith.constant 0 : i32
    %c0_i32_1 = arith.constant 0 : i32
    return %c0_i32, %c0_i32_0 : i32, i32
  }
  func.func @transform_3(%arg0: i32) -> (i32, i32) {
    %c0_i32 = arith.constant 0 : i32
    %c0_i32_0 = arith.constant 0 : i32
    %c0_i32_1 = arith.constant 0 : i32
    return %c0_i32, %c0_i32_0 : i32, i32
  }
  func.func @transform_4(%arg0: i32) -> (i32, i32) {
    %c0_i32 = arith.constant 0 : i32
    %c0_i32_0 = arith.constant 0 : i32
    %c0_i32_1 = arith.constant 0 : i32
    return %c0_i32, %c0_i32_0 : i32, i32
  }
  func.func @transform_5(%arg0: i32) -> (i32, i32) {
    %c0_i32 = arith.constant 0 : i32
    %c0_i32_0 = arith.constant 0 : i32
    %c0_i32_1 = arith.constant 0 : i32
    return %c0_i32, %c0_i32_0 : i32, i32
  }
  func.func @transform_6(%arg0: i32) -> (i32, i32) {
    %c0_i32 = arith.constant 0 : i32
    %c0_i32_0 = arith.constant 0 : i32
    %c0_i32_1 = arith.constant 0 : i32
    return %c0_i32, %c0_i32_0 : i32, i32
  }
  func.func @transform_7(%arg0: i32) -> (i32, i32) {
    %c0_i32 = arith.constant 0 : i32
    %c0_i32_0 = arith.constant 0 : i32
    %c0_i32_1 = arith.constant 0 : i32
    return %c0_i32, %c0_i32_0 : i32, i32
  }
  func.func @transform_8(%arg0: i32) -> (i32, i32) {
    %c0_i32 = arith.constant 0 : i32
    %c0_i32_0 = arith.constant 0 : i32
    %c0_i32_1 = arith.constant 0 : i32
    return %c0_i32, %c0_i32_0 : i32, i32
  }
  func.func @transform_9(%arg0: i32) -> (i32, i32) {
    %c0_i32 = arith.constant 0 : i32
    %c0_i32_0 = arith.constant 0 : i32
    return %arg0, %c0_i32 : i32, i32
  }
}

</mosaic_0001>

<bundles_post_ra>
// kernel: tpu_custom_call.1
= control target key start
LH: loop header
LB: loop body
LE: loop exit
PB: predicated region body
PF: predicated region fallthrough
CT: control target
= control target key end

     0   :  { %14 = vsyncpa [#allocation3], 0  ;;  %s1270_s30 = smov 0   ;;  %s1510_s0 = inlined_call_operand.vmem [shape: f32[48,16], index: 0, kind: input, shape index: {}]   ;;  %s1511_s1 = inlined_call_operand.vmem [shape: f32[16,128], index: 1, kind: input, shape index: {}]   ;;  %s1512_s2 = inlined_call_operand.vmem [shape: f32[128,128], index: 2, kind: input, shape index: {}]   ;;  %s1513_s3 = inlined_call_operand.hbm [shape: f32[128,128], index: 3, kind: input, shape index: {}]   ;;  %s1514_s4 = inlined_call_operand.vmem [shape: f32[128,8], index: 4, kind: input, shape index: {}]   ;;  %s1515_s5 = inlined_call_operand.vmem [shape: f32[1,128], index: 5, kind: input, shape index: {}]   ;;  %s1516_s6 = inlined_call_operand.vmem [shape: f32[1,128], index: 6, kind: input, shape index: {}]   ;;  %s1517_s7 = inlined_call_operand.vmem [shape: f32[1,128], index: 7, kind: input, shape index: {}]   ;;  %s1518_s8 = inlined_call_operand.vmem [shape: f32[1,8], index: 8, kind: input, shape index: {}]   ;;  %s1519_s9 = inlined_call_operand.vmem [shape: f32[48,8], index: 9, kind: output, shape index: {}]  }
   0x1 LB: > { %s843_s10 = sadd.s32 4294967295, %s1212_s30   ;;  %p845_p0 = scmp.ge.s32.totalorder %s1212_s30, 1  ;;  %s1212_s30 = sphi %s1270_s30, %s20_s30  }
   0x2   : > { %p245_p1 = scmp.lt.s32.totalorder %s1212_s30, 3  ;;  %s1214_s11 = smov [#allocation2]  }
   0x3   : > { %s263_s12 = sshll.u32 %s1214_s11, 4  ;;  %p1284_p3 = scmp.eq.s32.totalorder %s843_s10, 0  ;;  %s264_s12 = int_to_ptr.vmem [resolvable:$true] %s263_s12 }
   0x4   : > { %p1278_p2 = pnand %p845_p0, %p245_p1  ;;  %s1174_s18 = scalar_lea.hbm %s1513_s3, 2048 }
   0x5   : > { %s1524_s14 = scalar_select %p1284_p3, 1, 0 }
   0x6   : > { %s1523_s13 = scalar_select %p1278_p2, 1, 0 }
   0x7   : > { %p1154_p4 = pneg %p1278_p2  ;;  %p1175_p6 = scmp.ne.s32.totalorder %s1513_s3, %s1174_s18 }
   0x8   : > { %p1181_p10 = scmp.lt.u32.totalorder %s1174_s18, %s1513_s3 }
   0x9   : > { %p1292_p5 = pnand %p1284_p3, %p1154_p4 }
   0xb   : > { %p1176_p7 = pneg %p1292_p5 }
   0xd   : > { %p1177_p8 = pnand %p1176_p7, %p1175_p6 }
   0xf   : > { %p1178_p9 = pneg %p1177_p8 }
  0x11   : > { %p1183_p11 = pnand %p1181_p10, %p1178_p9 }
  0x13   : > { %1186 = shalt.err (!%p1183_p11)
}
  0x14   : > { %s1187_s23 = scalar_lea.vmem %s264_s12, 2048  ;;  %p1195_p1 = scmp.lt.s32.totalorder %s264_s12, %s264_s12 }
  0x15   : > { %p1188_p12 = scmp.ne.s32.totalorder %s264_s12, %s1187_s23  ;;  %p1196_p4 = scmp.lt.s32.totalorder %s1187_s23, %s1187_s23 }
  0x17   : > { %p1190_p13 = pnand %p1188_p12, %p1176_p7  ;;  %p1197_p3 = por %p1196_p4, %p1195_p1 }
  0x19   : > { %p1191_p0 = pneg %p1190_p13 }
  0x1b   : > { %p1198_p2 = pnand %p1197_p3, %p1191_p0 }
  0x1d   : > { %1201 = shalt.err (!%p1198_p2)
}
  0x1e   : > { %s1215_s24 = smov 128   ;;  %s1216_s25 = smov 8  }
  0x1f   : > { %1157 = dma.hbm_to_vmem [thread:$0]  (!%p1292_p5), %s1513_s3, 2048, %s264_s12, [#allocation3], %s1215_s24, %s1215_s24, %s1216_s25  }
  0x20   : > { %p1526_p6 = scmp.ne.s32.totalorder %s1523_s13, 0 }
  0x21   : > { %p1527_p8 = scmp.ne.s32.totalorder (!%p1526_p6), %s1524_s14, 0 }
  0x22   : > { %303 = sbr.rel (%p1526_p6) target bundleno = 921 (0x399), region = 56 }
  0x29   : > { %1207 = dma.done.wait (%p1527_p8), [#allocation3], 2048  }
  0x2a   : > { %1209 = vsyncadd (%p1527_p8), [#allocation3], 4294965248  ;;  %s339_s28 = smul.u32 3, %s843_s10  ;;  %v1217_v0 = vmov 0.0|0.0   ;;  %vm1218_vm0 = vmmov 0   ;;  %v1219_v1 = vmov 0.0  }
  0x2b   : > { %1059 = vmatprep.subr.bf16.mxu0 %v1217_v0  ;;  %927 = vmatprep.mubr.msk.f32.mxu0 %vm1218_vm0, %v1219_v1  ;;  %v354_v2 = vld [vmem:[%s1511_s1] sm:$0xff]  ;;  %v355_v3 = vld [vmem:[%s1511_s1 + $0x8] sm:$0xff]  ;;  %v458_v7 = vld [vmem:[%s1512_s2 + $0x10] sm:$0xff]  ;;  %vm363_vm1 = vcmask 130048   ;;  %vm771_vm2 = vcmask 64512  }
  0x2c   : > { %p340_p2 = scmp.lt.s32.totalorder %s339_s28, 5  ;;  %1062 = vmatprep.subr.bf16.mxu1 %v1217_v0  ;;  %968 = vmatprep.mubr.msk.f32.mxu1 %vm1218_vm0, %v1219_v1  ;;  %v456_v4 = vld [vmem:[%s1512_s2] sm:$0xff]  ;;  %v1060_v5 = vpack.c.bf16 %v355_v3, %v354_v2  ;;  %v457_v6 = vld [vmem:[%s1512_s2 + $0x8] sm:$0xff]  ;;  %v459_v8 = vld [vmem:[%s1512_s2 + $0x18] sm:$0xff] }
  0x2d   : > { %v1063_v10 = vpack.c.bf16 %v457_v6, %v456_v4  ;;  %v1066_v11 = vpack.c.bf16 %v459_v8, %v458_v7  ;;  %v460_v12 = vld [vmem:[%s1512_s2 + $0x20] sm:$0xff]  ;;  %v461_v13 = vld [vmem:[%s1512_s2 + $0x28] sm:$0xff]  ;;  %v462_v16 = vld [vmem:[%s1512_s2 + $0x30] sm:$0xff] }
  0x2e   : > { %s1529_s28 = smov (!%p340_p2, %s339_s28), 5  ;;  %1061 = vmatpush3.bf16.msra.mxu0 %v1060_v5  ;;  %v1069_v15 = vpack.c.bf16 %v461_v13, %v460_v12  ;;  %v463_v17 = vld [vmem:[%s1512_s2 + $0x38] sm:$0xff]  ;;  %v464_v20 = vld [vmem:[%s1512_s2 + $0x40] sm:$0xff]  ;;  %v465_v21 = vld [vmem:[%s1512_s2 + $0x48] sm:$0xff] }
  0x2f   : > { %s850_s29 = sshll.u32 %s1529_s28, 3  ;;  %1086 = vmatprep.subr.bf16.mxu0 %v1217_v0  ;;  %1064 = vmatpush3.bf16.msra.mxu1 %v1063_v10  ;;  %v1072_v19 = vpack.c.bf16 %v463_v17, %v462_v16  ;;  %v1075_v22 = vpack.c.bf16 %v465_v21, %v464_v20  ;;  %v466_v23 = vld [vmem:[%s1512_s2 + $0x50] sm:$0xff]  ;;  %v467_v24 = vld [vmem:[%s1512_s2 + $0x58] sm:$0xff]  ;;  %v468_v26 = vld [vmem:[%s1512_s2 + $0x60] sm:$0xff] }
  0x30   : > { %s343_s16 = scalar_lea.vmem %s1510_s0, %s850_s29  ;;  %1065 = vmatprep.subr.bf16.mxu1 %v1217_v0  ;;  %v1078_v25 = vpack.c.bf16 %v467_v24, %v466_v23  ;;  %v469_v27 = vld [vmem:[%s1512_s2 + $0x68] sm:$0xff]  ;;  %v470_v29 = vld [vmem:[%s1512_s2 + $0x70] sm:$0xff]  ;;  %v471_v30 = vld [vmem:[%s1512_s2 + $0x78] sm:$0xff] }
  0x31   : > { %v351_v9 = vld [vmem:[%s343_s16] sm:$0xff]  ;;  %v352_v14 = vld [vmem:[%s343_s16 + $0x8] sm:$0xff]  ;;  %v353_v18 = vld [vmem:[%s343_s16 + $0x10] sm:$0xff]  ;;  %v1081_v28 = vpack.c.bf16 %v469_v27, %v468_v26  ;;  %v1084_v31 = vpack.c.bf16 %v471_v30, %v470_v29  ;;  %s349_s16 = scalar_lea.vmem %s1519_s9, %s850_s29 }
  0x32   : > { %928 = vmatmul.mubr.msk.f32.vlgmr.msra.gmra.mrb[0].mxu0 %vm363_vm1, %v351_v9  ;;  %v562_v32 = vld [vmem:[#allocation2] sm:$0xff]  ;;  %v563_v33 = vld [vmem:[#allocation2 + $0x8] sm:$0xff]  ;;  %v564_v34 = vld [vmem:[#allocation2 + $0x10] sm:$0xff] }
  0x33   : > { %930 = vmatprep.mubr.msk.f32.mxu0 %vm1218_vm0, %v1219_v1  ;;  %1067 = vmatpush3.bf16.msra.mxu1 %v1066_v11  ;;  %v1087_v35 = vpack.c.bf16 %v563_v33, %v562_v32  ;;  %v565_v36 = vld [vmem:[#allocation2 + $0x18] sm:$0xff]  ;;  %v566_v38 = vld [vmem:[#allocation2 + $0x20] sm:$0xff]  ;;  %v567_v39 = vld [vmem:[#allocation2 + $0x28] sm:$0xff] }
  0x34   : > { %1068 = vmatprep.subr.bf16.mxu1 %v1217_v0  ;;  %v1090_v37 = vpack.c.bf16 %v565_v36, %v564_v34  ;;  %v1093_v40 = vpack.c.bf16 %v567_v39, %v566_v38  ;;  %v568_v41 = vld [vmem:[#allocation2 + $0x30] sm:$0xff]  ;;  %v569_v42 = vld [vmem:[#allocation2 + $0x38] sm:$0xff]  ;;  %v570_v44 = vld [vmem:[#allocation2 + $0x40] sm:$0xff] }
  0x35   : > { %1088 = vmatpush3.bf16.msra.mxu0 %v1087_v35  ;;  %v1096_v43 = vpack.c.bf16 %v569_v42, %v568_v41  ;;  %v571_v45 = vld [vmem:[#allocation2 + $0x48] sm:$0xff]  ;;  %v572_v47 = vld [vmem:[#allocation2 + $0x50] sm:$0xff]  ;;  %v573_v48 = vld [vmem:[#allocation2 + $0x58] sm:$0xff] }
  0x36   : > { %931 = vmatmul.mubr.msk.f32.gmra.mrb[2].mxu0 %vm363_vm1, %v352_v14  ;;  %1089 = vmatprep.subr.bf16.mxu0 %v1217_v0  ;;  %v1099_v46 = vpack.c.bf16 %v571_v45, %v570_v44  ;;  %v1102_v49 = vpack.c.bf16 %v573_v48, %v572_v47  ;;  %v574_v50 = vld [vmem:[#allocation2 + $0x60] sm:$0xff]  ;;  %v575_v51 = vld [vmem:[#allocation2 + $0x68] sm:$0xff]  ;;  %v576_v4 = vld [vmem:[#allocation2 + $0x70] sm:$0xff] }
  0x37   : > { %933 = vmatprep.mubr.msk.f32.mxu0 %vm1218_vm0, %v1219_v1  ;;  %1070 = vmatpush3.bf16.msra.mxu1 %v1069_v15  ;;  %v1105_v52 = vpack.c.bf16 %v575_v51, %v574_v50  ;;  %v852_v53 = vld [vmem:[%s1515_s5] ss:$0 sm:$0xff]  ;;  %v577_v5 = vld [vmem:[#allocation2 + $0x78] sm:$0xff]  ;;  %v669_v8 = vld [vmem:[%s1514_s4 + $0x8] sm:$0xff] }
  0x38   : > { %1071 = vmatprep.subr.bf16.mxu1 %v1217_v0  ;;  %v1108_v6 = vpack.c.bf16 %v577_v5, %v576_v4  ;;  %v668_v7 = vld [vmem:[%s1514_s4] sm:$0xff]  ;;  %v670_v10 = vld [vmem:[%s1514_s4 + $0x10] sm:$0xff]  ;;  %v671_v11 = vld [vmem:[%s1514_s4 + $0x18] sm:$0xff] }
  0x39   : > { %1091 = vmatpush3.bf16.msra.mxu0 %v1090_v37  ;;  %v1111_v9 = vpack.c.bf16 %v669_v8, %v668_v7  ;;  %v1114_v12 = vpack.c.bf16 %v671_v11, %v670_v10  ;;  %v672_v13 = vld [vmem:[%s1514_s4 + $0x20] sm:$0xff]  ;;  %v673_v14 = vld [vmem:[%s1514_s4 + $0x28] sm:$0xff]  ;;  %v674_v16 = vld [vmem:[%s1514_s4 + $0x30] sm:$0xff] }
  0x3a   : > { %934 = vmatmul.mubr.msk.f32.gmra.mrb[4].mxu0 %vm363_vm1, %v353_v18  ;;  %1092 = vmatprep.subr.bf16.mxu0 %v1217_v0  ;;  %v1117_v15 = vpack.c.bf16 %v673_v14, %v672_v13  ;;  %v675_v17 = vld [vmem:[%s1514_s4 + $0x38] sm:$0xff]  ;;  %v677_v20 = vld [vmem:[%s1514_s4 + $0x48] sm:$0xff]  ;;  %v682_v41 = vld [vmem:[%s1514_s4 + $0x70] sm:$0xff] }
  0x3b   : > { %1009 = vmatprep.mubr.msk.f32.mxu0 %vm1218_vm0, %v1219_v1  ;;  %1073 = vmatpush3.bf16.msra.mxu1 %v1072_v19  ;;  %v1120_v18 = vpack.c.bf16 %v675_v17, %v674_v16  ;;  %v676_v19 = vld [vmem:[%s1514_s4 + $0x40] sm:$0xff]  ;;  %v679_v23 = vld [vmem:[%s1514_s4 + $0x58] sm:$0xff]  ;;  %v681_v26 = vld [vmem:[%s1514_s4 + $0x68] sm:$0xff] }
  0x3c   : > { %1074 = vmatprep.subr.bf16.mxu1 %v1217_v0  ;;  %v1123_v21 = vpack.c.bf16 %v677_v20, %v676_v19  ;;  %v683_v42 = vld [vmem:[%s1514_s4 + $0x78] sm:$0xff]  ;;  %v857_v44 = vld [vmem:[%s1517_s7] ss:$0 sm:$0xff] }
  0x3d   : > { %1094 = vmatpush3.bf16.msra.mxu0 %v1093_v40 }
  0x3e   : > { %1095 = vmatprep.subr.bf16.mxu0 %v1217_v0 }
  0x3f   : > { %1076 = vmatpush3.bf16.msra.mxu1 %v1075_v22  ;;  %v678_v22 = vld [vmem:[%s1514_s4 + $0x50] sm:$0xff] }
  0x40   : > { %1077 = vmatprep.subr.bf16.mxu1 %v1217_v0  ;;  %v1126_v24 = vpack.c.bf16 %v679_v23, %v678_v22 }
  0x41   : > { %1097 = vmatpush3.bf16.msra.mxu0 %v1096_v43  ;;  %v1132_v43 = vpack.c.bf16 %v683_v42, %v682_v41 }
  0x42   : > { %1098 = vmatprep.subr.bf16.mxu0 %v1217_v0 }
  0x43   : > { %1079 = vmatpush3.bf16.msra.mxu1 %v1078_v25  ;;  %v680_v25 = vld [vmem:[%s1514_s4 + $0x60] sm:$0xff] }
  0x44   : > { %1080 = vmatprep.subr.bf16.mxu1 %v1217_v0  ;;  %v1129_v27 = vpack.c.bf16 %v681_v26, %v680_v25 }
  0x45   : > { %1100 = vmatpush3.bf16.msra.mxu0 %v1099_v46 }
  0x46   : > { %1101 = vmatprep.subr.bf16.mxu0 %v1217_v0 }
  0x47   : > { %1082 = vmatpush3.bf16.msra.mxu1 %v1081_v28  ;;  %v856_v28 = vld [vmem:[%s1516_s6] ss:$0 sm:$0xff] }
  0x48   : > { %1083 = vmatprep.subr.bf16.mxu1 %v1217_v0 }
  0x49   : > { %1103 = vmatpush3.bf16.msra.mxu0 %v1102_v49 }
  0x4a   : > { %1104 = vmatprep.subr.bf16.mxu0 %v1217_v0 }
  0x4b   : > { %1085 = vmatpush3.bf16.msra.mxu1 %v1084_v31 }
  0x4c   : > { %1134 = vmatprep.subr.bf16.mxu1 %v1217_v0 }
  0x4d   : > { %1106 = vmatpush3.bf16.msra.mxu0 %v1105_v52 }
  0x4e   : > { %1107 = vmatprep.subr.bf16.mxu0 %v1217_v0 }
  0x51   : > { %1109 = vmatpush3.bf16.msra.mxu0 %v1108_v6 }
  0x52   : > { %1110 = vmatprep.subr.bf16.mxu0 %v1217_v0 }
 0x105   : > { %v439_v54 = vpop.f32.mrb[0].mxu0 }
 0x106   : > { %v440_v55 = vadd.f32 %v852_v53, %v439_v54  ;;  %v929_v56 = vpop.f32.mrb[1].mxu0 }
 0x107   : > { %v858_v56 = vld [vmem:[%s1518_s8] ss:$0 sm:$0xff] }
 0x108   : > { %v453_v57 = vmax.f32 %v440_v55, 0.0 }
 0x109   : > { %v444_v58 = vpop.f32.mrb[2].mxu0 }
 0x10a   : > { %v445_v59 = vadd.f32 %v852_v53, %v444_v58  ;;  %v932_v60 = vpop.f32.mrb[3].mxu0  ;;  %969 = vmatmul.mubr.f32.vlgmr.msra.gmra.mrb[0].mxu1 %v453_v57 }
 0x10b   : > { %971 = vmatprep.mubr.msk.f32.mxu1 %vm1218_vm0, %v1219_v1  ;;  %1142 = vmatpush3.bf16.msra.mxu1 %v1111_v9 }
 0x10c   : > { %v454_v61 = vmax.f32 %v445_v59, 0.0  ;;  %1135 = vmatprep.subr.bf16.mxu1 %v1217_v0 }
 0x10d   : > { %v449_v62 = vpop.f32.mrb[4].mxu0 }
 0x10e   : > { %v450_v63 = vadd.f32 %v852_v53, %v449_v62  ;;  %v935_v2 = vpop.f32.mrb[5].mxu0  ;;  %972 = vmatmul.mubr.f32.gmra.mrb[2].mxu1 %v454_v61 }
 0x10f   : > { %974 = vmatprep.mubr.msk.f32.mxu1 %vm1218_vm0, %v1219_v1  ;;  %1143 = vmatpush3.bf16.msra.mxu1 %v1114_v12 }
 0x110   : > { %v455_v3 = vmax.f32 %v450_v63, 0.0  ;;  %1136 = vmatprep.subr.bf16.mxu1 %v1217_v0 }
 0x112   : > { %975 = vmatmul.mubr.f32.gmra.mrb[4].mxu1 %v455_v3 }
 0x113   : > { %1053 = vmatprep.mubr.msk.f32.mxu1 %vm1218_vm0, %v1219_v1  ;;  %1144 = vmatpush3.bf16.msra.mxu1 %v1117_v15 }
 0x114   : > { %1137 = vmatprep.subr.bf16.mxu1 %v1217_v0 }
 0x117   : > { %1145 = vmatpush3.bf16.msra.mxu1 %v1120_v18 }
 0x118   : > { %1138 = vmatprep.subr.bf16.mxu1 %v1217_v0 }
 0x11b   : > { %1146 = vmatpush3.bf16.msra.mxu1 %v1123_v21 }
 0x11c   : > { %1139 = vmatprep.subr.bf16.mxu1 %v1217_v0 }
 0x11f   : > { %1147 = vmatpush3.bf16.msra.mxu1 %v1126_v24 }
 0x120   : > { %1140 = vmatprep.subr.bf16.mxu1 %v1217_v0 }
 0x123   : > { %1148 = vmatpush3.bf16.msra.mxu1 %v1129_v27 }
 0x124   : > { %1141 = vmatprep.subr.bf16.mxu1 %v1217_v0 }
 0x127   : > { %1149 = vmatpush3.bf16.msra.mxu1 %v1132_v43 }
 0x1dd   : > { %v545_v29 = vpop.f32.mrb[0].mxu1 }
 0x1de   : > { %v546_v30 = vadd.f32 %v856_v28, %v545_v29  ;;  %v970_v31 = vpop.f32.mrb[1].mxu1 }
 0x1e0   : > { %v559_v32 = vmax.f32 %v546_v30, 0.0 }
 0x1e1   : > { %v550_v33 = vpop.f32.mrb[2].mxu1 }
 0x1e2   : > { %v551_v34 = vadd.f32 %v856_v28, %v550_v33  ;;  %v973_v35 = vpop.f32.mrb[3].mxu1  ;;  %1010 = vmatmul.mubr.f32.vlgmr.msra.gmra.mrb[6].mxu0 %v559_v32 }
 0x1e3   : > { %1012 = vmatprep.mubr.msk.f32.mxu0 %vm1218_vm0, %v1219_v1  ;;  %1112 = vmatpush3.bf16.msra.mxu0 %v1111_v9 }
 0x1e4   : > { %v560_v36 = vmax.f32 %v551_v34, 0.0  ;;  %1113 = vmatprep.subr.bf16.mxu0 %v1217_v0 }
 0x1e5   : > { %v555_v37 = vpop.f32.mrb[4].mxu1 }
 0x1e6   : > { %v556_v38 = vadd.f32 %v856_v28, %v555_v37  ;;  %v976_v39 = vpop.f32.mrb[5].mxu1  ;;  %1013 = vmatmul.mubr.f32.gmra.mrb[8].mxu0 %v560_v36 }
 0x1e7   : > { %1015 = vmatprep.mubr.msk.f32.mxu0 %vm1218_vm0, %v1219_v1  ;;  %1115 = vmatpush3.bf16.msra.mxu0 %v1114_v12 }
 0x1e8   : > { %v561_v40 = vmax.f32 %v556_v38, 0.0  ;;  %1116 = vmatprep.subr.bf16.mxu0 %v1217_v0 }
 0x1ea   : > { %1016 = vmatmul.mubr.f32.gmra.mrb[10].mxu0 %v561_v40 }
 0x1eb   : > { %1118 = vmatpush3.bf16.msra.mxu0 %v1117_v15  ;;  %1050 = vmatprep.mubr.msk.f32.mxu0 %vm1218_vm0, %v1219_v1 }
 0x1ec   : > { %1119 = vmatprep.subr.bf16.mxu0 %v1217_v0 }
 0x1ef   : > { %1121 = vmatpush3.bf16.msra.mxu0 %v1120_v18 }
 0x1f0   : > { %1122 = vmatprep.subr.bf16.mxu0 %v1217_v0 }
 0x1f3   : > { %1124 = vmatpush3.bf16.msra.mxu0 %v1123_v21 }
 0x1f4   : > { %1125 = vmatprep.subr.bf16.mxu0 %v1217_v0 }
 0x1f7   : > { %1127 = vmatpush3.bf16.msra.mxu0 %v1126_v24 }
 0x1f8   : > { %1128 = vmatprep.subr.bf16.mxu0 %v1217_v0 }
 0x1fb   : > { %1130 = vmatpush3.bf16.msra.mxu0 %v1129_v27 }
 0x1fc   : > { %1131 = vmatprep.subr.bf16.mxu0 %v1217_v0 }
 0x1ff   : > { %1133 = vmatpush3.bf16.msra.mxu0 %v1132_v43 }
 0x2b5   : > { %v651_v45 = vpop.f32.mrb[6].mxu0 }
 0x2b6   : > { %v652_v46 = vadd.f32 %v857_v44, %v651_v45  ;;  %v1011_v47 = vpop.f32.mrb[7].mxu0 }
 0x2b8   : > { %v665_v0 = vmax.f32 %v652_v46, 0.0 }
 0x2b9   : > { %v656_v48 = vpop.f32.mrb[8].mxu0 }
 0x2ba   : > { %v657_v49 = vadd.f32 %v857_v44, %v656_v48  ;;  %v1014_v50 = vpop.f32.mrb[9].mxu0  ;;  %1051 = vmatmul.mubr.f32.vlgmr.msra.gmra.mrb[12].mxu0 %v665_v0 }
 0x2bc   : > { %v666_v51 = vmax.f32 %v657_v49, 0.0 }
 0x2bd   : > { %v661_v52 = vpop.f32.mrb[10].mxu0 }
 0x2be   : > { %v662_v53 = vadd.f32 %v857_v44, %v661_v52  ;;  %v1017_v54 = vpop.f32.mrb[11].mxu0  ;;  %1054 = vmatmul.mubr.f32.vlgmr.msra.gmra.mrb[6].mxu1 %v666_v51 }
 0x2bf   : > { %1056 = vmatprep.mubr.msk.f32.mxu1 %vm1218_vm0, %v1219_v1 }
 0x2c0   : > { %v667_v55 = vmax.f32 %v662_v53, 0.0 }
 0x2c2   : > { %1057 = vmatmul.mubr.f32.gmra.mrb[8].mxu1 %v667_v55 }
 0x38d   : > { %v757_v57 = vpop.f32.mrb[12].mxu0 }
 0x38e   : > { %v758_v58 = vadd.f32 %v858_v56, %v757_v57  ;;  %v1052_v59 = vpop.f32.mrb[13].mxu0 }
 0x390   : > { %772 = vst.msk [vmem:[%s349_s16] sm:$0xff] %vm771_vm2, %v758_v58 }
 0x391   : > { %v762_v60 = vpop.f32.mrb[6].mxu1 }
 0x392   : > { %v763_v61 = vadd.f32 %v858_v56, %v762_v60  ;;  %v1055_v62 = vpop.f32.mrb[7].mxu1 }
 0x394   : > { %773 = vst.msk [vmem:[%s349_s16 + $0x8] sm:$0xff] %vm771_vm2, %v763_v61 }
 0x395   : > { %v767_v1 = vpop.f32.mrb[8].mxu1 }
 0x396   : > { %v768_v63 = vadd.f32 %v858_v56, %v767_v1  ;;  %v1058_v2 = vpop.f32.mrb[9].mxu1 }
 0x398   : > { %774 = vst.msk [vmem:[%s349_s16 + $0x10] sm:$0xff] %vm771_vm2, %v768_v63 }
 0x399 PF: > { %s20_s30 = sadd.s32 1, %s1212_s30  }
 0x39a   : > { %p17_p3 = scmp.ge.s32.totalorder %s20_s30, 4  }
 0x39c   :  { %19 = sbr.rel (!%p17_p3) target bundleno = 1 (0x1), region = 91 }
 0x3a3   :  { %797 = vsyncpa [#allocation3], 1 }
 0x3a4   :  { %799 = vsyncpa [#allocation3 + $0x1], 1 }

</bundles_post_ra>
